<compile_context>
chip_gen: v7x
topology: tpu7x:2x2x1
jax: 0.10.0
libtpu: 0.0.40
codegen_flags: <defaults>
</compile_context>

<pallas_src>
import functools

import jax
import jax.numpy as jnp
from jax.experimental import pallas as pl
from jax.experimental.pallas import tpu as pltpu


def _int_pow(x, n):
    """x**n for a small static positive integer n, using VPU multiplies only."""
    acc = x
    for _ in range(int(n) - 1):
        acc = acc * x
    return acc


def _gem_kernel_static_p(x_ref, o_ref, *, eps, kernel_size, p_int):
    # x_ref: VMEM (K, br, bl) f32 ; o_ref: VMEM (br, bl) f32
    inv_k = 1.0 / float(kernel_size)
    inv_p = 1.0 / float(p_int)
    acc = _int_pow(jnp.maximum(x_ref[0], eps), p_int)
    for k in range(1, kernel_size):
        acc = acc + _int_pow(jnp.maximum(x_ref[k], eps), p_int)
    # Only this half-size pow touches the EUP.
    o_ref[...] = jnp.power(acc * inv_k, inv_p).astype(o_ref.dtype)


def _gem_kernel_dynamic_p(p_ref, x_ref, o_ref, *, eps, kernel_size):
    # p_ref: SMEM (1,) f32 (learnable exponent); x_ref: VMEM (K, br, bl); o_ref: (br, bl)
    p = p_ref[0]
    inv_k = 1.0 / float(kernel_size)
    acc = jnp.power(jnp.maximum(x_ref[0], eps), p)
    for k in range(1, kernel_size):
        acc = acc + jnp.power(jnp.maximum(x_ref[k], eps), p)
    o_ref[...] = jnp.power(acc * inv_k, 1.0 / p).astype(o_ref.dtype)


def gem_pool1d(x, p, kernel_size=2, eps=1e-6, p_static=3,
               block_rows=256, block_lanes=1024):
    """GeM pooling.  x: (N, C, L) f32, p: (1,) f32 -> (N, C, L // kernel_size) f32.

    If `p_static` is a positive int it must equal the runtime value of `p`; the
    forward pow is then specialized to VPU multiplies.  Pass p_static=None for the
    general (SMEM scalar p, exp/log pow) path.
    """
    N, C, L = x.shape
    K = int(kernel_size)
    L_out = L // K
    R = N * C

    # Windowing glue: metadata reshape + one cheap leading-axis transpose.
    # (N, C, L) -> (R, L_out, K) -> (K, R, L_out): last two dims stay lane/sublane-dense.
    xw = x.reshape(R, L)[:, : L_out * K].reshape(R, L_out, K)
    xw = jnp.transpose(xw, (2, 0, 1))  # (K, R, L_out)

    # Lane-dense, (8,128)-aligned blocks, or the full extent when the array is smaller.
    br = block_rows if R > block_rows else R
    bl = block_lanes if L_out > block_lanes else L_out
    grid = (pl.cdiv(R, br), pl.cdiv(L_out, bl))

    x_spec = pl.BlockSpec((K, br, bl), lambda i, j: (0, i, j))
    o_spec = pl.BlockSpec((br, bl), lambda i, j: (i, j))
    compiler_params = pltpu.CompilerParams(
        dimension_semantics=("parallel", "parallel"),
        vmem_limit_bytes=32 * 1024 * 1024,
    )
    out_shape = jax.ShapeDtypeStruct((R, L_out), x.dtype)

    if p_static is not None:
        kernel = functools.partial(
            _gem_kernel_static_p, eps=eps, kernel_size=K, p_int=int(p_static))
        out = pl.pallas_call(
            kernel,
            out_shape=out_shape,
            grid=grid,
            in_specs=[x_spec],
            out_specs=o_spec,
            compiler_params=compiler_params,
        )(xw)
    else:
        kernel = functools.partial(_gem_kernel_dynamic_p, eps=eps, kernel_size=K)
        out = pl.pallas_call(
            kernel,
            out_shape=out_shape,
            grid=grid,
            in_specs=[pl.BlockSpec(memory_space=pltpu.SMEM), x_spec],
            out_specs=o_spec,
            compiler_params=compiler_params,
        )(p, xw)

    return out.reshape(N, C, L_out)


def _reference(x, p, kernel_size, eps):
    N, C, L = x.shape
    L_out = L // kernel_size
    y = jnp.maximum(x, eps) ** p[0]
    y = y[:, :, : L_out * kernel_size].reshape(N, C, L_out, kernel_size).mean(-1)
    return y ** (1.0 / p[0])


if __name__ == "__main__":
    key = jax.random.PRNGKey(0)

    # Module __init__: p = nn.Parameter(ones(1) * 3), kernel_size=2, eps=1e-6
    kernel_size = 2
    eps = 1e-6
    p = jnp.ones((1,), dtype=jnp.float32) * 3.0

    # Small 1D input consistent with the module: (batch=2, channels=4, length=16)
    x_small = jax.random.normal(key, (2, 4, 16), dtype=jnp.float32)

    out = gem_pool1d(x_small, p, kernel_size=kernel_size, eps=eps, p_static=3)
    out = jax.block_until_ready(out)
    ref = _reference(x_small, p, kernel_size, eps)
    assert out.shape == (2, 4, 16 // kernel_size)
    assert jnp.allclose(out, ref, rtol=1e-4, atol=1e-5)

    # Exercise the multi-block grid path (partial row & lane blocks + tail truncation).
    x_med = jax.random.normal(jax.random.PRNGKey(1), (4, 96, 2501), dtype=jnp.float32)
    out2 = jax.block_until_ready(
        gem_pool1d(x_med, p, kernel_size=kernel_size, eps=eps, p_static=3))
    ref2 = _reference(x_med, p, kernel_size, eps)
    assert out2.shape == (4, 96, 2501 // kernel_size)
    assert jnp.allclose(out2, ref2, rtol=1e-4, atol=1e-5)

    # Exercise the general learnable-p (SMEM scalar) path as well.
    out3 = jax.block_until_ready(
        gem_pool1d(x_small, p, kernel_size=kernel_size, eps=eps, p_static=None))
    assert jnp.allclose(out3, ref, rtol=1e-4, atol=1e-5)

    print("KERNEL_OK")
</pallas_src>

<mosaic_0001>
module attributes {stable_mosaic.version = 11 : i64} {
  func.func @_gem_kernel_static_p(%arg0: i32, %arg1: i32, %arg2: memref<2x8x8xf32, #tpu.memory_space<vmem>>, %arg3: memref<8x8xf32, #tpu.memory_space<vmem>>) attributes {dimension_semantics = [#tpu.dimension_semantics<parallel>, #tpu.dimension_semantics<parallel>], iteration_bounds = array<i64: 1, 1>, scalar_prefetch = 0 : i64, scratch_operands = 0 : i64, tpu.core_type = #tpu.core_type<tc>, window_params = [{transform_indices = @transform_0, window_bounds = array<i64: 2, 8, 8>}, {transform_indices = @transform_1, window_bounds = array<i64: 8, 8>}]} {
    %c0 = arith.constant 0 : index
    %c0_0 = arith.constant 0 : index
    %c0_1 = arith.constant 0 : index
    %0 = vector.load %arg2[%c0, %c0_0, %c0_1] : memref<2x8x8xf32, #tpu.memory_space<vmem>>, vector<1x8x8xf32>
    %1 = vector.shape_cast %0 : vector<1x8x8xf32> to vector<8x8xf32>
    %cst = arith.constant 9.99999997E-7 : f32
    %2 = vector.broadcast %cst : f32 to vector<8x8xf32>
    %3 = arith.maximumf %1, %2 : vector<8x8xf32>
    %4 = arith.mulf %3, %3 : vector<8x8xf32>
    %5 = arith.mulf %4, %3 : vector<8x8xf32>
    %c1 = arith.constant 1 : index
    %c0_2 = arith.constant 0 : index
    %c0_3 = arith.constant 0 : index
    %6 = vector.load %arg2[%c1, %c0_2, %c0_3] : memref<2x8x8xf32, #tpu.memory_space<vmem>>, vector<1x8x8xf32>
    %7 = vector.shape_cast %6 : vector<1x8x8xf32> to vector<8x8xf32>
    %cst_4 = arith.constant 9.99999997E-7 : f32
    %8 = vector.broadcast %cst_4 : f32 to vector<8x8xf32>
    %9 = arith.maximumf %7, %8 : vector<8x8xf32>
    %10 = arith.mulf %9, %9 : vector<8x8xf32>
    %11 = arith.mulf %10, %9 : vector<8x8xf32>
    %12 = arith.addf %5, %11 : vector<8x8xf32>
    %cst_5 = arith.constant 5.000000e-01 : f32
    %13 = vector.broadcast %cst_5 : f32 to vector<8x8xf32>
    %14 = arith.mulf %12, %13 : vector<8x8xf32>
    %cst_6 = arith.constant 0.333333343 : f32
    %15 = vector.broadcast %cst_6 : f32 to vector<8x8xf32>
    %16 = math.powf %14, %15 : vector<8x8xf32>
    %c0_7 = arith.constant 0 : index
    %c0_8 = arith.constant 0 : index
    %17 = vector.load %arg3[%c0_7, %c0_8] : memref<8x8xf32, #tpu.memory_space<vmem>>, vector<8x8xf32>
    tpu.vector_store %arg3[%c0_7, %c0_8], %16 {strides = array<i32>} : memref<8x8xf32, #tpu.memory_space<vmem>>, vector<8x8xf32>,
    return
  }
  func.func @transform_0(%arg0: i32, %arg1: i32) -> (i32, i32, i32) {
    %c0_i32 = arith.constant 0 : i32
    %c0_i32_0 = arith.constant 0 : i32
    return %c0_i32, %arg0, %arg1 : i32, i32, i32
  }
  func.func @transform_1(%arg0: i32, %arg1: i32) -> (i32, i32) {
    %c0_i32 = arith.constant 0 : i32
    return %arg0, %arg1 : i32, i32
  }
}

</mosaic_0001>

<bundles_post_ra>
// kernel: tpu_custom_call.1
= control target key start
LH: loop header
LB: loop body
LE: loop exit
PB: predicated region body
PF: predicated region fallthrough
CT: control target
= control target key end

     0   :  { %6 = vsyncpa [#allocation3], 0  ;;  %s164_s0 = inlined_call_operand.hbm [shape: f32[2,8,8], index: 0, kind: input, shape index: {}]   ;;  %s165_s1 = inlined_call_operand.hbm [shape: f32[8,8], index: 1, kind: output, shape index: {}]  }
   0x1   :  { %7 = vsyncpa [#allocation4], 0  ;;  %s126_s6 = smov [#allocation2]   ;;  %s78_s10 = scalar_lea.hbm %s164_s0, 256 }
   0x2   :  { %s13_s7 = sshll.u32 %s126_s6, 4  ;;  %p79_p0 = scmp.ne.s32.totalorder %s164_s0, %s78_s10  ;;  %s14_s7 = int_to_ptr.vmem [resolvable:$true] %s13_s7 }
   0x3   :  { %p82_p1 = scmp.lt.u32.totalorder %s78_s10, %s164_s0 }
   0x5   :  { %p84_p2 = pnand %p82_p1, %p79_p0 }
   0x7   :  { %87 = shalt.err (!%p84_p2)
}
   0x8   :  { %s88_s15 = scalar_lea.vmem %s14_s7, 256  ;;  %p93_p4 = scmp.lt.s32.totalorder %s14_s7, %s14_s7 }
   0x9   :  { %p89_p3 = scmp.ne.s32.totalorder %s14_s7, %s88_s15  ;;  %p94_p5 = scmp.lt.s32.totalorder %s88_s15, %s88_s15 }
   0xb   :  { %p95_p6 = por %p94_p5, %p93_p4 }
   0xd   :  { %p96_p7 = pnand %p95_p6, %p89_p3 }
   0xf   :  { %99 = shalt.err (!%p96_p7)
}
  0x10   :  { %s127_s16 = smov 128   ;;  %s128_s17 = smov 8  }
  0x11   :  { %19 = dma.hbm_to_vmem [thread:$0]  %s164_s0, 256, %s14_s7, [#allocation3], %s127_s16, %s127_s16, %s128_s17  }
  0x12   :  { %122 = dma.done.wait [#allocation3], 256  }
  0x13   :  { %123 = vsyncadd [#allocation3], 4294967040  ;;  %v23_v0 = vld [vmem:[#allocation2] sm:$0xff]  ;;  %v28_v1 = vld [vmem:[#allocation2 + $0x8] sm:$0xff]  ;;  %s129_s0 = smov [#allocation5]   ;;  %vm35_vm5 = vcmask 64512  }
  0x14   :  { %v24_v2 = vmax.f32 %v23_v0, 1e-06  ;;  %v29_v3 = vmax.f32 %v28_v1, 1e-06  ;;  %s43_s20 = sshll.u32 %s129_s0, 4  ;;  %s44_s20 = int_to_ptr.vmem [resolvable:$true] %s43_s20 }
  0x15   :  { %s100_s21 = scalar_lea.vmem %s44_s20, 128  ;;  %p105_p9 = scmp.lt.s32.totalorder %s44_s20, %s44_s20 }
  0x16   :  { %v25_v4 = vmul.f32 %v24_v2, %v24_v2  ;;  %v30_v5 = vmul.f32 %v29_v3, %v29_v3  ;;  %p101_p8 = scmp.ne.s32.totalorder %s44_s20, %s100_s21  ;;  %p106_p10 = scmp.lt.s32.totalorder %s100_s21, %s100_s21 }
  0x18   :  { %v26_v6 = vmul.f32 %v25_v4, %v24_v2  ;;  %v31_v7 = vmul.f32 %v30_v5, %v29_v3  ;;  %p107_p11 = por %p106_p10, %p105_p9 }
  0x1a   :  { %v32_v8 = vadd.f32 %v31_v7, %v26_v6  ;;  %p108_p12 = pnand %p107_p11, %p101_p8 }
  0x1c   :  { %v33_v9 = vmul.f32 0.5, %v32_v8 }
  0x1e   :  { %v54_v10 = vand.u32 2147483647, %v33_v9  ;;  %v58_v13 = vand.u32 2147483648, %v33_v9  ;;  %vm53_vm2 = vcmp.lt.f32.partialorder %v33_v9, 0.0  ;;  %vm52_vm3 = vcmp.eq.f32.partialorder %v33_v9, 0.0 }
  0x20   :  { %74 = vlog2.f32 %v54_v10  ;;  %vm62_vm0 = vweird.f32 %v54_v10  ;;  %vm64_vm1 = vcmp.eq.f32.partialorder %v54_v10, 0.0  ;;  %vm55_vm4 = vcmp.eq.f32.partialorder %v54_v10, inf }
  0x2a   :  { %v75_v11 = vpop.eup %74 }
  0x2b   :  { %v59_v12 = vmul.f32 0.33333334, %v75_v11 }
  0x2d   :  { %76 = vpow2.f32 %v59_v12 }
  0x37   :  { %v77_v14 = vpop.eup %76 }
  0x38   :  { %v61_v15 = vor.u32 %v77_v14, %v58_v13 }
  0x3a   :  { %v63_v16 = vsel %vm62_vm0, %v33_v9, %v61_v15 }
  0x3b   :  { %v66_v17 = vsel %vm64_vm1, %v58_v13, %v63_v16 }
  0x3c   :  { %v67_v18 = vsel %vm53_vm2, nan, %v66_v17 }
  0x3d   :  { %v68_v19 = vsel %vm52_vm3, 0.0, %v67_v18 }
  0x3e   :  { %v69_v20 = vsel %vm55_vm4, inf, %v68_v19 }
  0x3f   :  { %36 = vst.msk [vmem:[#allocation5] sm:$0xff] %vm35_vm5, %v69_v20 }
  0x40   :  { %111 = shalt.err (!%p108_p12)
}
  0x41   :  { %s112_s24 = scalar_lea.hbm %s165_s1, 128 }
  0x42   :  { %p113_p13 = scmp.ne.s32.totalorder %s165_s1, %s112_s24  ;;  %p116_p0 = scmp.lt.u32.totalorder %s112_s24, %s165_s1 }
  0x44   :  { %p118_p1 = pnand %p116_p0, %p113_p13 }
  0x46   :  { %121 = shalt.err (!%p118_p1)
}
  0x47   :  { %46 = dma.vmem_to_hbm [thread:$0]  %s44_s20, 128, %s165_s1, [#allocation4]  }
  0x48   :  { %124 = dma.done.wait [#allocation4], 128  }
  0x49   :  { %125 = vsyncadd [#allocation4], 4294967168 }
  0x4a   :  { %50 = vsyncpa [#allocation3], 1 }
  0x4b   :  { %51 = vsyncpa [#allocation4], 1 }

</bundles_post_ra>
